<compile_context>
chip_gen: v7x
topology: tpu7x:2x2x1
jax: 0.10.0
libtpu: 0.0.40
codegen_flags: <defaults>
</compile_context>

<pallas_src>
import functools

import jax
import jax.numpy as jnp
from jax.experimental import pallas as pl
from jax.experimental.pallas import tpu as pltpu


def _round_up(v, m):
    return (v + m - 1) // m * m


def _cdiv(a, b):
    return -(-a // b)


def _choose_tk(K, cap=1024):
    """K tile + padded K.  K <= cap: single k-tile, no padding needed."""
    if K <= cap:
        return K, K
    kp128 = _round_up(K, 128)
    nsteps = _cdiv(kp128, cap)
    tk = _round_up(_cdiv(kp128, nsteps), 128)
    return tk, tk * nsteps


def _select_tiles(M, N, tk, in_isz, out_isz, multi_k, has_bias):
    """Pick (tm, tn, vmem_limit_bytes) per-generation and per-regime."""
    try:
        vmem_bytes = int(pltpu.get_tpu_info().vmem_capacity_bytes)
    except Exception:  # pragma: no cover - interpret mode / old jax
        vmem_bytes = 64 << 20
    # Double-buffered working-set budget: half of physical VMEM, never above
    # 48 MiB (v7x has only 64 MiB/TC -- do not port a "use 128 MiB" config).
    budget = min(vmem_bytes // 2, 48 << 20)

    tn = min(512, _round_up(N, 128))

    # Regime-aware M tile: tall-skinny SIREN-style matmuls (small N and K,
    # huge M) amortize the ~0.35us per-step pipeline overhead with a big tm.
    tm_cap = 1024 if (N <= 512 and tk <= 512) else 256
    tm = min(tm_cap, _round_up(M, 16))  # 16: bf16 sublane packing (16, 128)

    def ws(tm_, tn_):
        b = 2 * tm_ * tk * in_isz       # x blocks, double-buffered
        b += 2 * tk * tn_ * in_isz      # W^T blocks, double-buffered
        b += 2 * tm_ * tn_ * out_isz    # output blocks, double-buffered
        if multi_k:
            b += tm_ * tn_ * 4          # f32 accumulator scratch
        if has_bias:
            b += 2 * tn_ * 4
        return b

    while ws(tm, tn) > budget and tm > 64:
        tm //= 2
    while ws(tm, tn) > budget and tn > 128:
        tn //= 2

    # v7x dual-TC: make sure a "parallel" axis has >= 2 blocks when possible.
    if _cdiv(M, tm) * _cdiv(N, tn) < 2 and M > 32:
        tm = max(16, _round_up(_cdiv(M, 2), 16))

    vmem_limit = int(min(vmem_bytes - (8 << 20),
                         max(ws(tm, tn) + (8 << 20), 32 << 20)))
    return tm, tn, vmem_limit


def _make_kernel(*, has_bias, multi_k, omega_0, activation, precision):
    """Build the fused linear kernel for a static (has_bias, multi_k) config."""

    def kernel(*refs):
        idx = 2
        x_ref, wt_ref = refs[0], refs[1]
        b_ref = None
        if has_bias:
            b_ref = refs[idx]
            idx += 1
        o_ref = refs[idx]
        idx += 1
        acc_ref = refs[idx] if multi_k else None

        def dot_tile():
            # x_ref: (tm, tk), wt_ref: (tk, tn) lane-dense RHS; f32 accumulate.
            return jax.lax.dot_general(
                x_ref[...], wt_ref[...],
                dimension_numbers=(((1,), (0,)), ((), ())),
                preferred_element_type=jnp.float32,
                precision=precision,
            )

        def epilogue(acc):
            out = acc
            if has_bias:
                out = out + b_ref[...].astype(jnp.float32)   # row broadcast
            out = omega_0 * out
            out = activation(out)
            o_ref[...] = out.astype(o_ref.dtype)

        if multi_k:
            k = pl.program_id(2)

            @pl.when(k == 0)
            def _():
                acc_ref[...] = jnp.zeros_like(acc_ref)

            acc_ref[...] += dot_tile()

            @pl.when(k == pl.num_programs(2) - 1)
            def _():
                epilogue(acc_ref[...])
        else:
            # Single K tile (SIREN case): no accumulator RMW, no scratch.
            epilogue(dot_tile())

    return kernel


class PallasLinear:
    """Pallas-TPU equivalent of the PyTorch `Linear` module.

    forward(x) = activation(omega_0 * (x @ weight.T + bias))

    weight: [out_features, in_features] (PyTorch nn.Linear layout)
    bias:   [out_features] or None
    compute_dtype: MXU operand dtype (default bf16; accumulation stays f32).
    precision: lax precision for the in-kernel dot (use Precision.HIGHEST with
               compute_dtype=jnp.float32 for full f32 accuracy).
    """

    def __init__(self, weight, bias=None, *, omega_0=1.0, activation=None,
                 compute_dtype=jnp.bfloat16, precision=None):
        weight = jnp.asarray(weight)
        N, K = weight.shape
        self.N, self.K = N, K
        self.omega_0 = float(omega_0)
        self.activation = activation if activation is not None else (lambda v: v)
        self.compute_dtype = compute_dtype
        self.precision = precision

        tk, Kp = _choose_tk(K)
        self.tk, self.Kp = tk, Kp
        self.multi_k = (Kp // tk) > 1

        # One-time weight prep: transpose to lane-dense [K, N], cast, K-pad.
        w_t = weight.T
        if compute_dtype is not None:
            w_t = w_t.astype(compute_dtype)
        if Kp != K:
            w_t = jnp.pad(w_t, ((0, Kp - K), (0, 0)))  # zeros: reduction-safe
        self.w_t = w_t

        self.bias = None
        if bias is not None:
            self.bias = jnp.asarray(bias, dtype=jnp.float32).reshape(1, N)

    def __call__(self, x):
        out_dtype = x.dtype
        lead = x.shape[:-1]
        K = x.shape[-1]
        assert K == self.K, "in_features mismatch"
        M = 1
        for d in lead:
            M *= d
        x2 = x.reshape(M, K)
        if self.compute_dtype is not None:
            x2 = x2.astype(self.compute_dtype)
        if self.Kp != K:
            # K-only pad (rare: K > 1024 and ragged); M/N are never padded.
            x2 = jnp.pad(x2, ((0, 0), (0, self.Kp - K)))

        N, tk, Kp, multi_k = self.N, self.tk, self.Kp, self.multi_k
        has_bias = self.bias is not None
        in_isz = jnp.dtype(x2.dtype).itemsize
        out_isz = jnp.dtype(out_dtype).itemsize

        tm, tn, vmem_limit = _select_tiles(
            M, N, tk, in_isz, out_isz, multi_k, has_bias)

        gm, gn = _cdiv(M, tm), _cdiv(N, tn)

        kernel = _make_kernel(
            has_bias=has_bias, multi_k=multi_k, omega_0=self.omega_0,
            activation=self.activation, precision=self.precision)

        if multi_k:
            grid = (gm, gn, Kp // tk)
            x_spec = pl.BlockSpec((tm, tk), lambda i, j, k: (i, k))
            w_spec = pl.BlockSpec((tk, tn), lambda i, j, k: (k, j))
            b_spec = pl.BlockSpec((1, tn), lambda i, j, k: (0, j))
            o_spec = pl.BlockSpec((tm, tn), lambda i, j, k: (i, j))
            scratch = [pltpu.VMEM((tm, tn), jnp.float32)]
            dims = ("parallel", "parallel", "arbitrary")
        else:
            grid = (gm, gn)
            x_spec = pl.BlockSpec((tm, tk), lambda i, j: (i, 0))
            w_spec = pl.BlockSpec((tk, tn), lambda i, j: (0, j))
            b_spec = pl.BlockSpec((1, tn), lambda i, j: (0, j))
            o_spec = pl.BlockSpec((tm, tn), lambda i, j: (i, j))
            scratch = []
            dims = ("parallel", "parallel")

        in_specs = [x_spec, w_spec] + ([b_spec] if has_bias else [])
        operands = [x2, self.w_t] + ([self.bias] if has_bias else [])

        out = pl.pallas_call(
            kernel,
            out_shape=jax.ShapeDtypeStruct((M, N), out_dtype),
            grid_spec=pltpu.PrefetchScalarGridSpec(
                num_scalar_prefetch=0,
                grid=grid,
                in_specs=in_specs,
                out_specs=o_spec,
                scratch_shapes=scratch,
            ),
            compiler_params=pltpu.CompilerParams(
                dimension_semantics=dims,
                vmem_limit_bytes=vmem_limit,
            ),
        )(*operands)

        return out.reshape(*lead, N)


def _reference(x, weight, bias, omega_0, activation, compute_dtype,
               precision=None):
    """Pure-JAX reference using the SAME operand dtypes as the kernel."""
    xc = x if compute_dtype is None else x.astype(compute_dtype)
    wc = weight if compute_dtype is None else weight.astype(compute_dtype)
    y = jnp.dot(xc, wc.T, preferred_element_type=jnp.float32,
                precision=precision)
    if bias is not None:
        y = y + bias.astype(jnp.float32)
    y = omega_0 * y
    if activation is not None:
        y = activation(y)
    return y.astype(x.dtype)


if __name__ == "__main__":
    # Shapes consistent with the module's forward: batch=8, in=32, out=64.
    batch, in_features, out_features = 8, 32, 64
    omega_0 = 30.0  # SIREN-style omega_0

    key = jax.random.PRNGKey(0)
    kx, kw, kb = jax.random.split(key, 3)
    x = jax.random.normal(kx, (batch, in_features), dtype=jnp.float32)
    bound = 1.0 / (in_features ** 0.5)
    weight = jax.random.uniform(kw, (out_features, in_features),
                                dtype=jnp.float32, minval=-bound, maxval=bound)
    bias = jax.random.uniform(kb, (out_features,), dtype=jnp.float32,
                              minval=-bound, maxval=bound)

    # 1) Default bf16 compute path, fused sine activation (SIREN layer).
    lin_sin = PallasLinear(weight, bias, omega_0=omega_0, activation=jnp.sin)
    y = jax.block_until_ready(lin_sin(x))
    y_ref = _reference(x, weight, bias, omega_0, jnp.sin, jnp.bfloat16)
    assert bool(jnp.allclose(y, y_ref, atol=1e-2, rtol=1e-2)), "sine mismatch"

    # 2) Identity activation, no bias, and non-2D input (..., in_features).
    lin_id = PallasLinear(weight, None, omega_0=omega_0, activation=None)
    x3 = x.reshape(2, 4, in_features)
    y3 = jax.block_until_ready(lin_id(x3))
    assert y3.shape == (2, 4, out_features)
    y3_ref = _reference(x, weight, None, omega_0, None, jnp.bfloat16)
    assert bool(jnp.allclose(y3.reshape(batch, out_features), y3_ref,
                             atol=1e-2, rtol=1e-2)), "no-bias mismatch"

    # 3) Full-precision f32 path (compute_dtype=f32 + Precision.HIGHEST).
    lin_f32 = PallasLinear(weight, bias, omega_0=omega_0, activation=jnp.sin,
                           compute_dtype=jnp.float32,
                           precision=jax.lax.Precision.HIGHEST)
    yf = jax.block_until_ready(lin_f32(x))
    yf_ref = _reference(x, weight, bias, omega_0, jnp.sin, None,
                        precision=jax.lax.Precision.HIGHEST)
    assert bool(jnp.allclose(yf, yf_ref, atol=1e-4, rtol=1e-4)), "f32 mismatch"

    # 4) Multi-tile / multi-k sanity check (K > 1024 exercises the
    #    accumulator path and ragged M/N edge blocks without any M/N pad).
    kx2, kw2, kb2 = jax.random.split(jax.random.PRNGKey(1), 3)
    M2, K2, N2 = 512, 2048, 640
    x2 = jax.random.normal(kx2, (M2, K2), dtype=jnp.float32)
    b2 = 1.0 / (K2 ** 0.5)
    w2 = jax.random.uniform(kw2, (N2, K2), dtype=jnp.float32,
                            minval=-b2, maxval=b2)
    bb2 = jax.random.uniform(kb2, (N2,), dtype=jnp.float32,
                             minval=-b2, maxval=b2)
    lin_big = PallasLinear(w2, bb2, omega_0=omega_0, activation=None)
    y2 = jax.block_until_ready(lin_big(x2))
    y2_ref = _reference(x2, w2, bb2, omega_0, None, jnp.bfloat16)
    assert bool(jnp.allclose(y2, y2_ref, atol=1e-2, rtol=1e-2)), "tiled mismatch"

    print("KERNEL_OK")
</pallas_src>

<mosaic_0001>
module attributes {stable_mosaic.version = 11 : i64} {
  func.func @kernel(%arg0: i32, %arg1: i32, %arg2: memref<16x32xbf16, #tpu.memory_space<vmem>>, %arg3: memref<32x128xbf16, #tpu.memory_space<vmem>>, %arg4: memref<1x128xf32, #tpu.memory_space<vmem>>, %arg5: memref<16x128xf32, #tpu.memory_space<vmem>>) attributes {dimension_semantics = [#tpu.dimension_semantics<parallel>, #tpu.dimension_semantics<parallel>], iteration_bounds = array<i64: 1, 1>, scalar_prefetch = 0 : i64, scratch_operands = 0 : i64, tpu.core_type = #tpu.core_type<tc>, window_params = [{transform_indices = @transform_0, window_bounds = array<i64: 16, 32>}, {transform_indices = @transform_1, window_bounds = array<i64: 32, 128>}, {transform_indices = @transform_2, window_bounds = array<i64: 1, 128>}, {transform_indices = @transform_3, window_bounds = array<i64: 16, 128>}]} {
    %c0 = arith.constant 0 : index
    %c0_0 = arith.constant 0 : index
    %0 = vector.load %arg2[%c0, %c0_0] : memref<16x32xbf16, #tpu.memory_space<vmem>>, vector<16x32xbf16>
    %c0_1 = arith.constant 0 : index
    %c0_2 = arith.constant 0 : index
    %1 = vector.load %arg3[%c0_1, %c0_2] : memref<32x128xbf16, #tpu.memory_space<vmem>>, vector<32x128xbf16>
    %cst = arith.constant dense<0.000000e+00> : vector<16x128xf32>
    %2 = tpu.matmul %0, %1, %cst {dimension_numbers = #tpu.dot_dimension_numbers<[1], [0], [0], [1], [0, 0, 1, 1], [], []>} : vector<16x32xbf16>, vector<32x128xbf16>, vector<16x128xf32> -> vector<16x128xf32>
    %c0_3 = arith.constant 0 : index
    %c0_4 = arith.constant 0 : index
    %3 = vector.load %arg4[%c0_3, %c0_4] : memref<1x128xf32, #tpu.memory_space<vmem>>, vector<1x128xf32>
    %4 = vector.broadcast %3 : vector<1x128xf32> to vector<16x128xf32>
    %5 = arith.addf %2, %4 : vector<16x128xf32>
    %cst_5 = arith.constant 3.000000e+01 : f32
    %6 = vector.broadcast %cst_5 : f32 to vector<16x128xf32>
    %7 = arith.mulf %6, %5 : vector<16x128xf32>
    %8 = math.sin %7 : vector<16x128xf32>
    %c0_6 = arith.constant 0 : index
    %c0_7 = arith.constant 0 : index
    %9 = vector.load %arg5[%c0_6, %c0_7] : memref<16x128xf32, #tpu.memory_space<vmem>>, vector<16x128xf32>
    tpu.vector_store %arg5[%c0_6, %c0_7], %8 {strides = array<i32>} : memref<16x128xf32, #tpu.memory_space<vmem>>, vector<16x128xf32>,
    return
  }
  func.func @transform_0(%arg0: i32, %arg1: i32) -> (i32, i32) {
    %c0_i32 = arith.constant 0 : i32
    %c0_i32_0 = arith.constant 0 : i32
    return %arg0, %c0_i32 : i32, i32
  }
  func.func @transform_1(%arg0: i32, %arg1: i32) -> (i32, i32) {
    %c0_i32 = arith.constant 0 : i32
    %c0_i32_0 = arith.constant 0 : i32
    return %c0_i32, %arg1 : i32, i32
  }
  func.func @transform_2(%arg0: i32, %arg1: i32) -> (i32, i32) {
    %c0_i32 = arith.constant 0 : i32
    %c0_i32_0 = arith.constant 0 : i32
    return %c0_i32, %arg1 : i32, i32
  }
  func.func @transform_3(%arg0: i32, %arg1: i32) -> (i32, i32) {
    %c0_i32 = arith.constant 0 : i32
    return %arg0, %arg1 : i32, i32
  }
}

</mosaic_0001>

<bundles_post_ra>
// kernel: tpu_custom_call.1
= control target key start
LH: loop header
LB: loop body
LE: loop exit
PB: predicated region body
PF: predicated region fallthrough
CT: control target
= control target key end

     0   :  { %8 = vsyncpa [#allocation3], 0  ;;  %s622_s0 = inlined_call_operand.hbm [shape: bf16[8,32], index: 0, kind: input, shape index: {}]   ;;  %s623_s1 = inlined_call_operand.hbm [shape: bf16[32,64], index: 1, kind: input, shape index: {}]   ;;  %s624_s2 = inlined_call_operand.vmem [shape: f32[1,64], index: 2, kind: input, shape index: {}]   ;;  %s625_s3 = inlined_call_operand.hbm [shape: f32[8,64], index: 3, kind: output, shape index: {}]  }
   0x1   :  { %9 = vsyncpa [#allocation6], 0 }
   0x2   :  { %10 = vsyncpa [#allocation4], 0 }
   0x3   :  { %15 = vsyncadd [#allocation3], 64  ;;  %s479_s12 = smov [#allocation2]   ;;  %s407_s16 = scalar_lea.hbm %s622_s0, 64 }
   0x4   :  { %s16_s13 = sshll.u32 %s479_s12, 4  ;;  %p408_p0 = scmp.ne.s32.totalorder %s622_s0, %s407_s16  ;;  %s17_s13 = int_to_ptr.vmem [resolvable:$true] %s16_s13 }
   0x5   :  { %p411_p1 = scmp.lt.u32.totalorder %s407_s16, %s622_s0 }
   0x7   :  { %p413_p2 = pnand %p411_p1, %p408_p0 }
   0x9   :  { %416 = shalt.err (!%p413_p2)
}
   0xa   :  { %s417_s21 = scalar_lea.vmem %s17_s13, 64  ;;  %s421_s22 = scalar_lea.vmem %s17_s13, 128 }
   0xb   :  { %p418_p3 = scmp.ne.s32.totalorder %s17_s13, %s417_s21  ;;  %p422_p4 = scmp.lt.s32.totalorder %s17_s13, %s17_s13 }
   0xc   :  { %p423_p5 = scmp.lt.s32.totalorder %s421_s22, %s417_s21 }
   0xe   :  { %p424_p6 = por %p423_p5, %p422_p4 }
  0x10   :  { %p425_p7 = pnand %p424_p6, %p418_p3 }
  0x12   :  { %428 = shalt.err (!%p425_p7)
}
  0x13   :  { %s480_s23 = smov 64   ;;  %s481_s24 = smov 4  }
  0x14   :  { %22 = dma.hbm_to_vmem [thread:$0]  %s622_s0, 64, %s17_s13, [#allocation3], %s480_s23, %s480_s23, %s481_s24  }
  0x15   :  { %s482_s27 = smov [#allocation5]   ;;  %s429_s4 = scalar_lea.hbm %s623_s1, 256 }
  0x16   :  { %s28_s28 = sshll.u32 %s482_s27, 4  ;;  %p430_p8 = scmp.ne.s32.totalorder %s623_s1, %s429_s4  ;;  %s29_s28 = int_to_ptr.vmem [resolvable:$true] %s28_s28 }
  0x17   :  { %p433_p9 = scmp.lt.u32.totalorder %s429_s4, %s623_s1 }
  0x19   :  { %p435_p10 = pnand %p433_p9, %p430_p8 }
  0x1b   :  { %438 = shalt.err (!%p435_p10)
}
  0x1c   :  { %s439_s9 = scalar_lea.vmem %s29_s28, 256  ;;  %p444_p12 = scmp.lt.s32.totalorder %s29_s28, %s29_s28 }
  0x1d   :  { %p440_p11 = scmp.ne.s32.totalorder %s29_s28, %s439_s9  ;;  %p445_p13 = scmp.lt.s32.totalorder %s439_s9, %s439_s9 }
  0x1f   :  { %p446_p0 = por %p445_p13, %p444_p12 }
  0x21   :  { %p447_p1 = pnand %p446_p0, %p440_p11 }
  0x23   :  { %450 = shalt.err (!%p447_p1)
}
  0x24   :  { %34 = dma.hbm_to_vmem [thread:$0]  %s623_s1, 256, %s29_s28, [#allocation6], %s480_s23, %s480_s23, %s481_s24  }
  0x25   :  { %473 = dma.done.wait [#allocation3], 128  }
  0x26   :  { %474 = vsyncadd [#allocation3], 4294967168 }
  0x27   :  { %475 = dma.done.wait [#allocation6], 256  }
  0x28   :  { %476 = vsyncadd [#allocation6], 4294967040  ;;  %v483_v0 = vmov 0.0   ;;  %vm484_vm0 = vmmov 0   ;;  %v396_v1 = vld [vmem:[#allocation5] sm:$0xff]   ;;  %v397_v2 = vld [vmem:[#allocation5 + $0x8] sm:$0xff]  }
  0x29   :  { %365 = vmatprep.subr.bf16.mxu0 %v483_v0  ;;  %369 = vmatprep.mubr.msk.bf16.mxu0 %vm484_vm0, %v483_v0  ;;  %v398_v3 = vld [vmem:[#allocation2] sm:$0xff]   ;;  %vm74_vm1 = vcmask 261120   ;;  %v485_v31 = vmov 683565275   ;;  %v486_v34 = vmov 2475754826  }
  0x2a   :  { %366 = vmatpush3.bf16.msra.mxu0 %v396_v1  ;;  %v349_v4 = vld [vmem:[%s624_s2] ss:$0 sm:$0xff]  ;;  %v487_v36 = vmov 2131351028   ;;  %v488_v38 = vmov 2102212464  }
  0x2b   :  { %367 = vmatprep.subr.bf16.mxu0 %v483_v0  ;;  %v489_v40 = vmov 920167782   ;;  %v490_v47 = vmov 1326507024  }
  0x2e   :  { %368 = vmatpush3.bf16.msra.mxu0 %v397_v2 }
  0x31   :  { %370 = vmatmul.mubr.msk.bf16.vlgmr.msra.gmra.mrb[0].mxu0 %vm74_vm1, %v398_v3 }
 0x104   :  { %v112_v5 = vpop.f32.mrb[0].mxu0 }
 0x105   :  { %v113_v6 = vadd.f32 %v349_v4, %v112_v5  ;;  %v371_v7 = vpop.f32.mrb[1].mxu0 }
 0x106   :  { %v115_v8 = vpop.f32.mrb[2].mxu0 }
 0x107   :  { %v541_v9 = vmul.f32 30.0, %v113_v6  ;;  %v116_v10 = vadd.f32 %v349_v4, %v115_v8  ;;  %v372_v11 = vpop.f32.mrb[3].mxu0 }
 0x109   :  { %v121_v12 = vand.u32 2147483647, %v541_v9  ;;  %v124_v13 = vand.u32 2139095040, %v541_v9  ;;  %v545_v14 = vmul.f32 30.0, %v116_v10  ;;  %vm123_vm0 = vcmp.lt.s32.totalorder %v541_v9, 0 }
 0x10b   :  { %v125_v15 = vshrl.u32 %v124_v13, 23  ;;  %v128_v16 = vand.u32 8388607, %v121_v12  ;;  %v228_v17 = vand.u32 2139095040, %v545_v14  ;;  %v225_v19 = vand.u32 2147483647, %v545_v14 }
 0x10c   :  { %vm122_vm1 = vcmp.le.f32.partialorder %v121_v12, 0.7853982 }
 0x10d   :  { %v354_v18 = vadd.s32 4294967169, %v125_v15  ;;  %v229_v20 = vshrl.u32 %v228_v17, 23  ;;  %v129_v22 = vor.u32 8388608, %v128_v16  ;;  %v232_v24 = vand.u32 8388607, %v225_v19 }
 0x10f   :  { %v131_v21 = vadd.s32 1, %v354_v18  ;;  %v358_v23 = vadd.s32 4294967169, %v229_v20  ;;  %v553_v29 = vshll.u32 %v129_v22, 8  ;;  %v233_v33 = vor.u32 8388608, %v232_v24 }
 0x111   :  { %vm132_vm2 = vcmp.gt.s32.totalorder %v131_v21, 0  ;;  %v235_v26 = vadd.s32 1, %v358_v23  ;;  %v273_v2 = vshll.u32 %v233_v33, 8 }
 0x112   :  { %v133_v25 = vsel %vm132_vm2, %v131_v21, 0  ;;  %vm227_vm2 = vcmp.lt.s32.totalorder %v545_v14, 0 }
 0x113   :  { %v134_v27 = vshrl.u32 %v133_v25, 5  ;;  %v135_v28 = vand.u32 31, %v133_v25  ;;  %vm236_vm3 = vcmp.gt.s32.totalorder %v235_v26, 0 }
 0x114   :  { %v237_v52 = vsel %vm236_vm3, %v235_v26, 0  ;;  %vm599_vm3 = vcmp.le.f32.partialorder %v225_v19, 0.7853982 }
 0x115   :  { %v136_v30 = vsub.s32 32, %v135_v28  ;;  %v138_v32 = vshll.u32 %v485_v31, %v135_v28  ;;  %v141_v35 = vshll.u32 %v486_v34, %v135_v28  ;;  %v144_v37 = vshll.u32 %v487_v36, %v135_v28 }
 0x116   :  { %v147_v39 = vshll.u32 %v488_v38, %v135_v28  ;;  %v150_v41 = vshll.u32 %v489_v40, %v135_v28  ;;  %vm153_vm4 = vcmp.lt.s32.totalorder %v134_v27, 1  ;;  %vm155_vm5 = vcmp.lt.s32.totalorder %v134_v27, 3 }
 0x117   :  { %v139_v42 = vshrl.u32 %v486_v34, %v136_v30  ;;  %v142_v43 = vshrl.u32 %v487_v36, %v136_v30  ;;  %v145_v44 = vshrl.u32 %v488_v38, %v136_v30  ;;  %v137_v45 = vshrl.u32 %v485_v31, %v136_v30 }
 0x118   :  { %v148_v46 = vshrl.u32 %v489_v40, %v136_v30  ;;  %v151_v48 = vshrl.u32 %v490_v47, %v136_v30  ;;  %vm156_vm6 = vcmp.lt.s32.totalorder %v134_v27, 4  ;;  %v239_v55 = vand.u32 31, %v237_v52 }
 0x119   :  { %v140_v49 = vor.u32 %v139_v42, %v138_v32  ;;  %v143_v50 = vor.u32 %v142_v43, %v141_v35  ;;  %v146_v51 = vor.u32 %v145_v44, %v144_v37  ;;  %vm154_vm7 = vcmp.lt.s32.totalorder %v134_v27, 2 }
 0x11a   :  { %v149_v53 = vor.u32 %v148_v46, %v147_v39  ;;  %v152_v54 = vor.u32 %v151_v48, %v150_v41  ;;  %v240_v63 = vsub.s32 32, %v239_v55  ;;  %v238_v6 = vshrl.u32 %v237_v52, 5 }
 0x11b   :  { %v157_v56 = vsel %vm153_vm4, %v137_v45, %v140_v49  ;;  %v158_v57 = vsel %vm156_vm6, %v146_v51, 2102212464  ;;  %v161_v58 = vsel %vm153_vm4, %v140_v49, %v143_v50  ;;  %v165_v59 = vsel %vm153_vm4, %v143_v50, %v146_v51 }
 0x11c   :  { %v159_v60 = vsel %vm155_vm5, %v143_v50, %v158_v57  ;;  %v162_v61 = vsel %vm156_vm6, %v149_v53, 920167782  ;;  %v166_v62 = vsel %vm156_vm6, %v152_v54, 1326507024  ;;  %v242_v13 = vshll.u32 %v485_v31, %v239_v55 }
 0x11d   :  { %v163_v0 = vsel %vm155_vm5, %v146_v51, %v162_v61  ;;  %v167_v1 = vsel %vm155_vm5, %v149_v53, %v166_v62  ;;  %v160_v3 = vsel %vm154_vm7, %v157_v56, %v159_v60  ;;  %v243_v15 = vshrl.u32 %v486_v34, %v240_v63 }
 0x11e   :  { %v164_v4 = vsel %vm154_vm7, %v161_v58, %v163_v0  ;;  %v168_v5 = vsel %vm154_vm7, %v165_v59, %v167_v1  ;;  %v245_v16 = vshll.u32 %v486_v34, %v239_v55  ;;  %v246_v17 = vshrl.u32 %v487_v36, %v240_v63 }
 0x11f   :  { %v565_v7 = vmul.u32.u64.low %v553_v29, %v168_v5  ;;  %v566_v8 = vmul.u32.u64.high %v553_v29, %v168_v5, %v565_v7  ;;  %v569_v10 = vmul.u32.u64.low %v553_v29, %v164_v4  ;;  %v570_v11 = vmul.u32.u64.high %v553_v29, %v164_v4, %v569_v10 }
 0x120   :  { %v248_v18 = vshll.u32 %v487_v36, %v239_v55  ;;  %v249_v20 = vshrl.u32 %v488_v38, %v240_v63  ;;  %v251_v21 = vshll.u32 %v488_v38, %v239_v55  ;;  %v252_v22 = vshrl.u32 %v489_v40, %v240_v63 }
 0x121   :  { %v244_v23 = vor.u32 %v243_v15, %v242_v13  ;;  %v247_v24 = vor.u32 %v246_v17, %v245_v16  ;;  %v254_v25 = vshll.u32 %v489_v40, %v239_v55  ;;  %v255_v26 = vshrl.u32 %v490_v47, %v240_v63 }
 0x122   :  { %v176_v27 = vmul.u32 %v553_v29, %v160_v3  ;;  %vm178_vm8 = vc.u32 %v566_v8, %v569_v10  ;;  %v179_v28 = vadd.s32 1, %v570_v11  ;;  %v250_v30 = vor.u32 %v249_v20, %v248_v18 }
 0x123   :  { %v241_v32 = vshrl.u32 %v485_v31, %v240_v63  ;;  %v253_v33 = vor.u32 %v252_v22, %v251_v21  ;;  %v256_v34 = vor.u32 %v255_v26, %v254_v25  ;;  %vm257_vm9 = vcmp.lt.s32.totalorder %v238_v6, 1 }
 0x124   :  { %v180_v35 = vsel %vm178_vm8, %v179_v28, %v570_v11  ;;  %vm259_vm10 = vcmp.lt.s32.totalorder %v238_v6, 3  ;;  %vm260_vm11 = vcmp.lt.s32.totalorder %v238_v6, 4  ;;  %v265_v36 = vsel %vm257_vm9, %v244_v23, %v247_v24 }
 0x125   :  { %v181_v37 = vadd.s32 %v180_v35, %v176_v27  ;;  %v262_v38 = vsel %vm260_vm11, %v250_v30, 2102212464  ;;  %v266_v39 = vsel %vm260_vm11, %v253_v33, 920167782  ;;  %v269_v29 = vsel %vm257_vm9, %v247_v24, %v250_v30 }
 0x126   :  { %vm258_vm12 = vcmp.lt.s32.totalorder %v238_v6, 2  ;;  %v261_v40 = vsel %vm257_vm9, %v241_v32, %v244_v23  ;;  %v267_v41 = vsel %vm259_vm10, %v250_v30, %v266_v39  ;;  %v270_v42 = vsel %vm260_vm11, %v256_v34, 1326507024 }
 0x127   :  { %v182_v43 = vadd.s32 536870912, %v181_v37  ;;  %v263_v44 = vsel %vm259_vm10, %v247_v24, %v262_v38  ;;  %v268_v45 = vsel %vm258_vm12, %v265_v36, %v267_v41  ;;  %v271_v31 = vsel %vm259_vm10, %v253_v33, %v270_v42 }
 0x128   :  { %v272_v46 = vsel %vm258_vm12, %v269_v29, %v271_v31  ;;  %v580_v47 = vmul.u32.u64.low %v273_v2, %v268_v45  ;;  %v581_v48 = vmul.u32.u64.high %v273_v2, %v268_v45, %v580_v47  ;;  %v264_v52 = vsel %vm258_vm12, %v261_v40, %v263_v44 }
 0x129   :  { %v183_v49 = vshrl.u32 %v182_v43, 30  ;;  %v583_v50 = vmul.u32.u64.low %v273_v2, %v272_v46  ;;  %v584_v51 = vmul.u32.u64.high %v273_v2, %v272_v46, %v583_v50  ;;  %v280_v56 = vmul.u32 %v273_v2, %v264_v52 }
 0x12a   :  { %v283_v54 = vadd.s32 1, %v581_v48  ;;  %v177_v5 = vadd.s32 %v569_v10, %v566_v8  ;;  %vm213_vm7 = vweird.f32 %v541_v9  ;;  %vm317_vm11 = vweird.f32 %v545_v14 }
 0x12b   :  { %v184_v53 = vshll.u32 %v183_v49, 30  ;;  %vm282_vm13 = vc.u32 %v584_v51, %v580_v47  ;;  %v207_v26 = vsub.s32 4, %v183_v49  ;;  %v281_v8 = vadd.s32 %v580_v47, %v584_v51 }
 0x12c   :  { %v284_v57 = vsel %vm282_vm13, %v283_v54, %v581_v48 }
 0x12d   :  { %v185_v55 = vsub.s32 %v181_v37, %v184_v53  ;;  %v285_v59 = vadd.s32 %v284_v57, %v280_v56  ;;  %v208_v36 = vsel %vm123_vm0, %v207_v26, %v183_v49 }
 0x12e   :  { %v210_v29 = vsel %vm122_vm1, 0, %v208_v36 }
 0x12f   :  { %v187_v58 = vsub.s32 0, %v185_v55  ;;  %v286_v61 = vadd.s32 536870912, %v285_v59  ;;  %v214_v43 = vadd.s32 3, %v210_v29 }
 0x131   :  { %v355_v60 = vmin.u32 %v187_v58, %v185_v55  ;;  %v287_v63 = vshrl.u32 %v286_v61, 30  ;;  %v215_v46 = vand.u32 3, %v214_v43 }
 0x133   :  { %v189_v62 = vclz %v355_v60  ;;  %v288_v1 = vshll.u32 %v287_v63, 30  ;;  %v311_v45 = vsub.s32 4, %v287_v63  ;;  %vm220_vm4 = vcmp.eq.s32.totalorder %v215_v46, 2 }
 0x134   :  { %vm217_vm5 = vcmp.eq.s32.totalorder %v215_v46, 0  ;;  %vm216_vm6 = vcmp.lt.s32.totalorder %v215_v46, 2 }
 0x135   :  { %v356_v0 = vadd.s32 4294967294, %v189_v62  ;;  %v289_v4 = vsub.s32 %v285_v59, %v288_v1  ;;  %v312_v48 = vsel %vm227_vm2, %v311_v45, %v287_v63 }
 0x136   :  { %v314_v54 = vsel %vm599_vm3, 0, %v312_v48 }
 0x137   :  { %vm357_vm14 = vcmp.lt.s32.totalorder %v356_v0, 0  ;;  %v291_v7 = vsub.s32 0, %v289_v4  ;;  %v318_v57 = vadd.s32 3, %v314_v54 }
 0x138   :  { %v192_v3 = vsel %vm357_vm14, 0, %v356_v0 }
 0x139   :  { %v193_v6 = vsub.s32 32, %v192_v3  ;;  %v197_v2 = vsub.s32 4294967266, %v192_v3  ;;  %v194_v11 = vshll.u32 %v185_v55, %v192_v3  ;;  %v359_v16 = vmin.u32 %v291_v7, %v289_v4 }
 0x13a   :  { %v319_v59 = vand.u32 3, %v318_v57 }
 0x13b   :  { %v195_v13 = vshrl.u32 %v177_v5, %v193_v6  ;;  %v198_v15 = vadd.s32 127, %v197_v2  ;;  %v293_v20 = vclz %v359_v16 }
 0x13c   :  { %vm324_vm8 = vcmp.eq.s32.totalorder %v319_v59, 2  ;;  %vm321_vm9 = vcmp.eq.s32.totalorder %v319_v59, 0  ;;  %vm320_vm10 = vcmp.lt.s32.totalorder %v319_v59, 2 }
 0x13d   :  { %v196_v17 = vor.u32 %v195_v13, %v194_v11  ;;  %v199_v18 = vshll.u32 %v198_v15, 23  ;;  %v360_v22 = vadd.s32 4294967294, %v293_v20 }
 0x13f   :  { %v200_v21 = vor.u32 4788187, %v199_v18  ;;  %v203_v24 = vcvt.s32.f32 %v196_v17  ;;  %vm361_vm15 = vcmp.lt.s32.totalorder %v360_v22, 0 }
 0x140   :  { %v296_v27 = vsel %vm361_vm15, 0, %v360_v22 }
 0x141   :  { %v201_v23 = vand.u32 2147483647, %v200_v21  ;;  %v297_v10 = vsub.s32 32, %v296_v27  ;;  %v301_v28 = vsub.s32 4294967266, %v296_v27  ;;  %v298_v32 = vshll.u32 %v289_v4, %v296_v27 }
 0x143   :  { %v204_v25 = vmul.f32 %v203_v24, %v201_v23  ;;  %v299_v33 = vshrl.u32 %v281_v8, %v297_v10  ;;  %v302_v34 = vadd.s32 127, %v301_v28 }
 0x145   :  { %v205_v30 = vxor.u32 2147483648, %v204_v25  ;;  %v300_v38 = vor.u32 %v299_v33, %v298_v32  ;;  %v303_v39 = vshll.u32 %v302_v34, 23 }
 0x147   :  { %v206_v35 = vsel %vm123_vm0, %v205_v30, %v204_v25  ;;  %v304_v40 = vor.u32 4788187, %v303_v39  ;;  %v307_v42 = vcvt.s32.f32 %v300_v38 }
 0x148   :  { %v209_v37 = vsel %vm122_vm1, %v541_v9, %v206_v35 }
 0x149   :  { %399 = vcosq.f32 %v209_v37  ;;  %v305_v41 = vand.u32 2147483647, %v304_v40 }
 0x14a   :  { %401 = vsinq.f32 %v209_v37 }
 0x14b   :  { %v308_v44 = vmul.f32 %v307_v42, %v305_v41 }
 0x14d   :  { %v309_v31 = vxor.u32 2147483648, %v308_v44 }
 0x14f   :  { %v310_v47 = vsel %vm227_vm2, %v309_v31, %v308_v44 }
 0x150   :  { %v313_v50 = vsel %vm599_vm3, %v545_v14, %v310_v47 }
 0x151   :  { %403 = vcosq.f32 %v313_v50 }
 0x152   :  { %405 = vsinq.f32 %v313_v50 }
 0x153   :  { %v400_v49 = vpop.eup %399 }
 0x154   :  { %v402_v51 = vpop.eup %401  ;;  %v221_v52 = vxor.u32 2147483648, %v400_v49 }
 0x155   :  { %v218_v53 = vxor.u32 2147483648, %v402_v51 }
 0x156   :  { %v222_v19 = vsel %vm220_vm4, %v221_v52, %v402_v51 }
 0x157   :  { %v219_v55 = vsel %vm217_vm5, %v400_v49, %v218_v53 }
 0x158   :  { %v223_v56 = vsel %vm216_vm6, %v219_v55, %v222_v19 }
 0x159   :  { %v224_v58 = vsel %vm213_vm7, nan, %v223_v56 }
 0x15a   :  { %329 = vst [vmem:[#allocation7] sm:$0xff] %v224_v58 }
 0x15b   :  { %v404_v60 = vpop.eup %403 }
 0x15c   :  { %v406_v61 = vpop.eup %405  ;;  %v325_v62 = vxor.u32 2147483648, %v404_v60 }
 0x15d   :  { %v322_v63 = vxor.u32 2147483648, %v406_v61 }
 0x15e   :  { %v326_v0 = vsel %vm324_vm8, %v325_v62, %v406_v61 }
 0x15f   :  { %v323_v1 = vsel %vm321_vm9, %v404_v60, %v322_v63 }
 0x160   :  { %v327_v3 = vsel %vm320_vm10, %v323_v1, %v326_v0 }
 0x161   :  { %v328_v4 = vsel %vm317_vm11, nan, %v327_v3 }
 0x162   :  { %330 = vst [vmem:[#allocation7 + $0x8] sm:$0xff] %v328_v4 }
 0x163   :  { %335 = vsyncadd [#allocation4], 128  ;;  %s491_s1 = smov [#allocation7]  }
 0x164   :  { %s336_s2 = sshll.u32 %s491_s1, 4  ;;  %s337_s2 = int_to_ptr.vmem [resolvable:$true] %s336_s2 }
 0x165   :  { %s451_s13 = scalar_lea.vmem %s337_s2, 128  ;;  %s455_s14 = scalar_lea.vmem %s337_s2, 256 }
 0x166   :  { %p452_p2 = scmp.ne.s32.totalorder %s337_s2, %s451_s13  ;;  %p456_p3 = scmp.lt.s32.totalorder %s337_s2, %s337_s2 }
 0x167   :  { %p457_p4 = scmp.lt.s32.totalorder %s455_s14, %s451_s13 }
 0x169   :  { %p458_p5 = por %p457_p4, %p456_p3 }
 0x16b   :  { %p459_p6 = pnand %p458_p5, %p452_p2 }
 0x16d   :  { %462 = shalt.err (!%p459_p6)
}
 0x16e   :  { %s463_s17 = scalar_lea.hbm %s625_s3, 128 }
 0x16f   :  { %p464_p7 = scmp.ne.s32.totalorder %s625_s3, %s463_s17  ;;  %p467_p8 = scmp.lt.u32.totalorder %s463_s17, %s625_s3 }
 0x171   :  { %p469_p9 = pnand %p467_p8, %p464_p7 }
 0x173   :  { %472 = shalt.err (!%p469_p9)
}
 0x174   :  { %s492_s22 = smov 128   ;;  %s493_s23 = smov 8  }
 0x175   :  { %342 = dma.vmem_to_hbm [thread:$0]  %s337_s2, 128, %s625_s3, [#allocation4], %s492_s22, %s492_s22, %s493_s23  }
 0x176   :  { %477 = dma.done.wait [#allocation4], 256  }
 0x177   :  { %478 = vsyncadd [#allocation4], 4294967040 }
 0x178   :  { %346 = vsyncpa [#allocation3], 1 }
 0x179   :  { %347 = vsyncpa [#allocation6], 1 }
 0x17a   :  { %348 = vsyncpa [#allocation4], 1 }

</bundles_post_ra>
